<compile_context>
chip_gen: v7x
topology: tpu7x:2x2x1
jax: 0.10.0
libtpu: 0.0.40
codegen_flags: <defaults>
</compile_context>

<pallas_src>
import numpy as np
import jax
import jax.numpy as jnp
from jax.experimental import pallas as pl
from jax.experimental.pallas import tpu as pltpu


# --------------------------------------------------------------------------
# Kernel
# --------------------------------------------------------------------------
def _basic_block_kernel(x_ref, m1_ref, s1_ref, b1_ref, m2_ref, s2_ref, b2_ref,
                        out_ref):
    """Fused conv1+bn1+relu -> conv2+bn2+add+relu for one batch tile.

    x_ref, out_ref : (BT, H, W*C)      lane-dense activations (f32)
    m1_ref, m2_ref : (3, W*Cin, W*Cout) bf16 per-vertical-tap band matrices
                                        (circular wrap along W baked in)
    s*_ref, b*_ref : (1, W*C)          f32 folded BatchNorm scale / bias
    """
    BT, H, WC = x_ref.shape

    x = x_ref[...].astype(jnp.float32)                         # (BT, H, WC)

    def conv_bn(act, m_ref, s_ref, b_ref):
        # Circular wrap along H: whole-tile roll along axis=1 (per-image wrap,
        # batch dim untouched).  jnp.roll keeps the kernel portable (interpret
        # + Mosaic); on hardware, pltpu.roll(act, 1, 1) / pltpu.roll(act, H-1, 1)
        # is the XLU (free-slot) variant — shifts must be non-negative.
        up = jnp.roll(act, 1, axis=1)                          # up[:, h] = act[:, h-1]
        dn = jnp.roll(act, H - 1, axis=1)                      # dn[:, h] = act[:, h+1]

        def rows(a):                                           # bf16 MXU operand
            return a.reshape(BT * H, WC).astype(jnp.bfloat16)

        # Three accumulating matmuls against resident per-tap weight slabs.
        acc = jnp.dot(rows(up), m_ref[0], preferred_element_type=jnp.float32)
        acc += jnp.dot(rows(act), m_ref[1], preferred_element_type=jnp.float32)
        acc += jnp.dot(rows(dn), m_ref[2], preferred_element_type=jnp.float32)

        # BatchNorm in the f32 epilogue (scale not folded into bf16 weights).
        return (acc * s_ref[...] + b_ref[...]).reshape(BT, H, WC)

    h1 = jnp.maximum(conv_bn(x, m1_ref, s1_ref, b1_ref), 0.0)   # conv1+bn1+relu
    h2 = conv_bn(h1, m2_ref, s2_ref, b2_ref)                    # conv2+bn2
    out_ref[...] = jnp.maximum(h2 + x, 0.0).astype(out_ref.dtype)  # +res, relu


# --------------------------------------------------------------------------
# Wrapper helpers
# --------------------------------------------------------------------------
def _fold_bn(gamma, beta, mean, var, eps=1e-5):
    scale = gamma / jnp.sqrt(var + eps)
    bias = beta - mean * scale
    return scale, bias


def _band_matrix(w_hwio, width, dtype=jnp.bfloat16):
    """Build M of shape (3, W*Cin, W*Cout): one matrix per vertical tap, such
    that a circular 3x3 conv over lane-dense rows is
        out = roll(x,+1,H) @ M[0] + x @ M[1] + roll(x,-1,H) @ M[2],
    with the circular wrap along W baked into each M[t].  Built once in the
    wrapper; BN scale is NOT folded (applied in the f32 epilogue)."""
    kh, kw, cin, cout = w_hwio.shape
    assert kh == 3 and kw == 3
    # sel[kx, w', w] = 1  iff  (w + kx - 1) mod W == w'   (circular wrap in W)
    sel = np.zeros((3, width, width), np.float32)
    for kx in range(3):
        for w in range(width):
            sel[kx, (w + kx - 1) % width, w] = 1.0
    m = jnp.einsum("xpw,txio->tpiwo", jnp.asarray(sel), w_hwio.astype(jnp.float32))
    return m.reshape(3, width * cin, width * cout).astype(dtype)


def _pick_batch_tile(n, h, wc, *, itemsize=4, target_rows=256,
                     act_vmem_cap=2 << 20, min_steps=1):
    """MXU- and VMEM-aware batch tile:
      * smallest divisor of N whose matmul row count BT*H >= target_rows
        (fills the MXU systolic rows on v5e/v6e/v7x) and whose activation
        block stays under act_vmem_cap (~2 MiB leaves headroom for the
        kernel's ~10x working set even on v7x's 64 MiB VMEM),
      * otherwise the largest divisor that fits.
    min_steps=1: on single-TC chips (v5e/v6e) fewer, bigger steps win; pass
    min_steps>=2 on v7x (2 TCs), ideally >=4 per core so the BlockSpec
    double-buffer can prefetch the next activation tile."""
    divisors = [d for d in range(1, n + 1) if n % d == 0]
    fits = [d for d in divisors
            if d * h * wc * itemsize <= act_vmem_cap and (n // d) >= min_steps]
    fits = fits or [1]
    for d in fits:
        if d * h >= target_rows:
            return d
    return fits[-1]


def basic_block_forward(x_nchw, params, *, batch_tile=None):
    """BasicBlock forward. x_nchw: (N, C, H, W) float32 (inplanes == planes,
    stride=1, downsample=None).  W*C should be a multiple of 128 to stay
    lane-dense (demo: 16*8 = 128)."""
    N, C, H, W = x_nchw.shape
    WC = W * C

    # NCHW -> lane-dense (N, H, W*C), lane ordering w-major / c-minor.
    x = jnp.transpose(x_nchw, (0, 2, 3, 1)).reshape(N, H, WC)

    s1, b1 = _fold_bn(params["bn1_gamma"], params["bn1_beta"],
                      params["bn1_mean"], params["bn1_var"])
    s2, b2 = _fold_bn(params["bn2_gamma"], params["bn2_beta"],
                      params["bn2_mean"], params["bn2_var"])

    m1 = _band_matrix(params["w1"], W)                        # (3, WC, WC) bf16
    m2 = _band_matrix(params["w2"], W)
    s1r = jnp.tile(s1, W)[None, :].astype(jnp.float32)        # (1, WC)
    b1r = jnp.tile(b1, W)[None, :].astype(jnp.float32)
    s2r = jnp.tile(s2, W)[None, :].astype(jnp.float32)
    b2r = jnp.tile(b2, W)[None, :].astype(jnp.float32)

    bt = batch_tile if batch_tile is not None else _pick_batch_tile(N, H, WC)
    grid = (N // bt,)

    # Weight/bias specs use a constant index_map, so the pipeline never
    # re-fetches them across grid steps.
    # TODO(synk): at production channel counts drop their second pipeline
    #             buffer (pipeline_mode=pl.Buffered(1)) or stage them once
    #             into VMEM scratch to free VMEM for a bigger batch tile.
    out = pl.pallas_call(
        _basic_block_kernel,
        out_shape=jax.ShapeDtypeStruct((N, H, WC), x_nchw.dtype),
        grid=grid,
        in_specs=[
            pl.BlockSpec((bt, H, WC), lambda n: (n, 0, 0)),
            pl.BlockSpec((3, WC, WC), lambda n: (0, 0, 0)),
            pl.BlockSpec((1, WC), lambda n: (0, 0)),
            pl.BlockSpec((1, WC), lambda n: (0, 0)),
            pl.BlockSpec((3, WC, WC), lambda n: (0, 0, 0)),
            pl.BlockSpec((1, WC), lambda n: (0, 0)),
            pl.BlockSpec((1, WC), lambda n: (0, 0)),
        ],
        out_specs=pl.BlockSpec((bt, H, WC), lambda n: (n, 0, 0)),
        compiler_params=pltpu.CompilerParams(
            dimension_semantics=("parallel",)),
    )(x, m1, s1r, b1r, m2, s2r, b2r)

    return jnp.transpose(out.reshape(N, H, W, C), (0, 3, 1, 2))  # -> NCHW


# --------------------------------------------------------------------------
# Pure-JAX reference (sanity check)
# --------------------------------------------------------------------------
def _reference(x_nchw, params):
    x = jnp.transpose(x_nchw, (0, 2, 3, 1))  # NHWC

    def conv(inp, w):
        xp = jnp.pad(inp, ((0, 0), (1, 1), (1, 1), (0, 0)), mode="wrap")
        return jax.lax.conv_general_dilated(
            xp, w, window_strides=(1, 1), padding="VALID",
            dimension_numbers=("NHWC", "HWIO", "NHWC"))

    s1, b1 = _fold_bn(params["bn1_gamma"], params["bn1_beta"],
                      params["bn1_mean"], params["bn1_var"])
    s2, b2 = _fold_bn(params["bn2_gamma"], params["bn2_beta"],
                      params["bn2_mean"], params["bn2_var"])

    out = jnp.maximum(conv(x, params["w1"]) * s1 + b1, 0.0)
    out = conv(out, params["w2"]) * s2 + b2
    out = jnp.maximum(out + x, 0.0)
    return jnp.transpose(out, (0, 3, 1, 2))


def init_params(key, inplanes, planes):
    k1, k2, k3, k4 = jax.random.split(key, 4)
    return {
        "w1": jax.random.normal(k1, (3, 3, inplanes, planes), jnp.float32)
              / jnp.sqrt(9.0 * inplanes),
        "w2": jax.random.normal(k2, (3, 3, planes, planes), jnp.float32)
              / jnp.sqrt(9.0 * planes),
        "bn1_gamma": jnp.ones((planes,), jnp.float32),
        "bn1_beta": jnp.zeros((planes,), jnp.float32),
        "bn1_mean": 0.1 * jax.random.normal(k3, (planes,), jnp.float32),
        "bn1_var": jnp.ones((planes,), jnp.float32),
        "bn2_gamma": jnp.ones((planes,), jnp.float32),
        "bn2_beta": jnp.zeros((planes,), jnp.float32),
        "bn2_mean": 0.1 * jax.random.normal(k4, (planes,), jnp.float32),
        "bn2_var": jnp.ones((planes,), jnp.float32),
    }


if __name__ == "__main__":
    key = jax.random.PRNGKey(0)
    kx, kp = jax.random.split(key)

    # inplanes == planes == 8, stride = 1, W*C = 128 -> lane-dense tiles.
    N, C, H, W = 2, 8, 16, 16
    x = jax.random.normal(kx, (N, C, H, W), jnp.float32)
    params = init_params(kp, inplanes=C, planes=C)

    out = jax.block_until_ready(basic_block_forward(x, params))
    ref = jax.block_until_ready(_reference(x, params))

    assert out.shape == (N, C, H, W)
    # bf16 MXU operands vs f32 reference -> tolerance ~1e-2 scale.
    assert jnp.allclose(out, ref, atol=3e-2, rtol=3e-2), float(
        jnp.max(jnp.abs(out - ref)))

    print("KERNEL_OK")
</pallas_src>

<mosaic_0001>
module attributes {stable_mosaic.version = 11 : i64} {
  func.func @_basic_block_kernel(%arg0: i32, %arg1: memref<2x16x128xf32, #tpu.memory_space<vmem>>, %arg2: memref<3x128x128xbf16, #tpu.memory_space<vmem>>, %arg3: memref<1x128xf32, #tpu.memory_space<vmem>>, %arg4: memref<1x128xf32, #tpu.memory_space<vmem>>, %arg5: memref<3x128x128xbf16, #tpu.memory_space<vmem>>, %arg6: memref<1x128xf32, #tpu.memory_space<vmem>>, %arg7: memref<1x128xf32, #tpu.memory_space<vmem>>, %arg8: memref<2x16x128xf32, #tpu.memory_space<vmem>>) attributes {dimension_semantics = [#tpu.dimension_semantics<parallel>], iteration_bounds = array<i64: 1>, scalar_prefetch = 0 : i64, scratch_operands = 0 : i64, tpu.core_type = #tpu.core_type<tc>, window_params = [{transform_indices = @transform_0, window_bounds = array<i64: 2, 16, 128>}, {pipeline_mode = #tpu.pipeline_mode<synchronous>, transform_indices = @transform_1, window_bounds = array<i64: 3, 128, 128>}, {pipeline_mode = #tpu.pipeline_mode<synchronous>, transform_indices = @transform_2, window_bounds = array<i64: 1, 128>}, {pipeline_mode = #tpu.pipeline_mode<synchronous>, transform_indices = @transform_3, window_bounds = array<i64: 1, 128>}, {pipeline_mode = #tpu.pipeline_mode<synchronous>, transform_indices = @transform_4, window_bounds = array<i64: 3, 128, 128>}, {pipeline_mode = #tpu.pipeline_mode<synchronous>, transform_indices = @transform_5, window_bounds = array<i64: 1, 128>}, {pipeline_mode = #tpu.pipeline_mode<synchronous>, transform_indices = @transform_6, window_bounds = array<i64: 1, 128>}, {transform_indices = @transform_7, window_bounds = array<i64: 2, 16, 128>}]} {
    %c0 = arith.constant 0 : index
    %c0_0 = arith.constant 0 : index
    %c0_1 = arith.constant 0 : index
    %0 = vector.load %arg1[%c0, %c0_0, %c0_1] : memref<2x16x128xf32, #tpu.memory_space<vmem>>, vector<2x16x128xf32>
    %1 = vector.extract_strided_slice %0 {offsets = [0, 15, 0], sizes = [2, 1, 128], strides = [1, 1, 1]} : vector<2x16x128xf32> to vector<2x1x128xf32>
    %2 = vector.extract_strided_slice %0 {offsets = [0, 0, 0], sizes = [2, 15, 128], strides = [1, 1, 1]} : vector<2x16x128xf32> to vector<2x15x128xf32>
    %3 = tpu.concatenate %1, %2 in 1 : vector<2x1x128xf32>, vector<2x15x128xf32> -> vector<2x16x128xf32>
    %4 = vector.extract_strided_slice %0 {offsets = [0, 1, 0], sizes = [2, 15, 128], strides = [1, 1, 1]} : vector<2x16x128xf32> to vector<2x15x128xf32>
    %5 = vector.extract_strided_slice %0 {offsets = [0, 0, 0], sizes = [2, 1, 128], strides = [1, 1, 1]} : vector<2x16x128xf32> to vector<2x1x128xf32>
    %6 = tpu.concatenate %4, %5 in 1 : vector<2x15x128xf32>, vector<2x1x128xf32> -> vector<2x16x128xf32>
    %7 = vector.shape_cast %3 : vector<2x16x128xf32> to vector<32x128xf32>
    %8 = arith.truncf %7 : vector<32x128xf32> to vector<32x128xbf16>
    %c0_2 = arith.constant 0 : index
    %c0_3 = arith.constant 0 : index
    %c0_4 = arith.constant 0 : index
    %9 = vector.load %arg2[%c0_2, %c0_3, %c0_4] : memref<3x128x128xbf16, #tpu.memory_space<vmem>>, vector<1x128x128xbf16>
    %10 = vector.shape_cast %9 : vector<1x128x128xbf16> to vector<128x128xbf16>
    %cst = arith.constant dense<0.000000e+00> : vector<32x128xf32>
    %11 = tpu.matmul %8, %10, %cst {dimension_numbers = #tpu.dot_dimension_numbers<[1], [0], [0], [1], [0, 0, 1, 1], [], []>} : vector<32x128xbf16>, vector<128x128xbf16>, vector<32x128xf32> -> vector<32x128xf32>
    %12 = vector.shape_cast %0 : vector<2x16x128xf32> to vector<32x128xf32>
    %13 = arith.truncf %12 : vector<32x128xf32> to vector<32x128xbf16>
    %c1 = arith.constant 1 : index
    %c0_5 = arith.constant 0 : index
    %c0_6 = arith.constant 0 : index
    %14 = vector.load %arg2[%c1, %c0_5, %c0_6] : memref<3x128x128xbf16, #tpu.memory_space<vmem>>, vector<1x128x128xbf16>
    %15 = vector.shape_cast %14 : vector<1x128x128xbf16> to vector<128x128xbf16>
    %cst_7 = arith.constant dense<0.000000e+00> : vector<32x128xf32>
    %16 = tpu.matmul %13, %15, %cst_7 {dimension_numbers = #tpu.dot_dimension_numbers<[1], [0], [0], [1], [0, 0, 1, 1], [], []>} : vector<32x128xbf16>, vector<128x128xbf16>, vector<32x128xf32> -> vector<32x128xf32>
    %17 = arith.addf %11, %16 : vector<32x128xf32>
    %18 = vector.shape_cast %6 : vector<2x16x128xf32> to vector<32x128xf32>
    %19 = arith.truncf %18 : vector<32x128xf32> to vector<32x128xbf16>
    %c2 = arith.constant 2 : index
    %c0_8 = arith.constant 0 : index
    %c0_9 = arith.constant 0 : index
    %20 = vector.load %arg2[%c2, %c0_8, %c0_9] : memref<3x128x128xbf16, #tpu.memory_space<vmem>>, vector<1x128x128xbf16>
    %21 = vector.shape_cast %20 : vector<1x128x128xbf16> to vector<128x128xbf16>
    %cst_10 = arith.constant dense<0.000000e+00> : vector<32x128xf32>
    %22 = tpu.matmul %19, %21, %cst_10 {dimension_numbers = #tpu.dot_dimension_numbers<[1], [0], [0], [1], [0, 0, 1, 1], [], []>} : vector<32x128xbf16>, vector<128x128xbf16>, vector<32x128xf32> -> vector<32x128xf32>
    %23 = arith.addf %17, %22 : vector<32x128xf32>
    %c0_11 = arith.constant 0 : index
    %c0_12 = arith.constant 0 : index
    %24 = vector.load %arg3[%c0_11, %c0_12] : memref<1x128xf32, #tpu.memory_space<vmem>>, vector<1x128xf32>
    %25 = vector.broadcast %24 : vector<1x128xf32> to vector<32x128xf32>
    %26 = arith.mulf %23, %25 : vector<32x128xf32>
    %c0_13 = arith.constant 0 : index
    %c0_14 = arith.constant 0 : index
    %27 = vector.load %arg4[%c0_13, %c0_14] : memref<1x128xf32, #tpu.memory_space<vmem>>, vector<1x128xf32>
    %28 = vector.broadcast %27 : vector<1x128xf32> to vector<32x128xf32>
    %29 = arith.addf %26, %28 : vector<32x128xf32>
    %30 = vector.shape_cast %29 : vector<32x128xf32> to vector<2x16x128xf32>
    %cst_15 = arith.constant 0.000000e+00 : f32
    %31 = vector.broadcast %cst_15 : f32 to vector<2x16x128xf32>
    %32 = arith.maximumf %30, %31 : vector<2x16x128xf32>
    %33 = vector.extract_strided_slice %32 {offsets = [0, 15, 0], sizes = [2, 1, 128], strides = [1, 1, 1]} : vector<2x16x128xf32> to vector<2x1x128xf32>
    %34 = vector.extract_strided_slice %32 {offsets = [0, 0, 0], sizes = [2, 15, 128], strides = [1, 1, 1]} : vector<2x16x128xf32> to vector<2x15x128xf32>
    %35 = tpu.concatenate %33, %34 in 1 : vector<2x1x128xf32>, vector<2x15x128xf32> -> vector<2x16x128xf32>
    %36 = vector.extract_strided_slice %32 {offsets = [0, 1, 0], sizes = [2, 15, 128], strides = [1, 1, 1]} : vector<2x16x128xf32> to vector<2x15x128xf32>
    %37 = vector.extract_strided_slice %32 {offsets = [0, 0, 0], sizes = [2, 1, 128], strides = [1, 1, 1]} : vector<2x16x128xf32> to vector<2x1x128xf32>
    %38 = tpu.concatenate %36, %37 in 1 : vector<2x15x128xf32>, vector<2x1x128xf32> -> vector<2x16x128xf32>
    %39 = vector.shape_cast %35 : vector<2x16x128xf32> to vector<32x128xf32>
    %40 = arith.truncf %39 : vector<32x128xf32> to vector<32x128xbf16>
    %c0_16 = arith.constant 0 : index
    %c0_17 = arith.constant 0 : index
    %c0_18 = arith.constant 0 : index
    %41 = vector.load %arg5[%c0_16, %c0_17, %c0_18] : memref<3x128x128xbf16, #tpu.memory_space<vmem>>, vector<1x128x128xbf16>
    %42 = vector.shape_cast %41 : vector<1x128x128xbf16> to vector<128x128xbf16>
    %cst_19 = arith.constant dense<0.000000e+00> : vector<32x128xf32>
    %43 = tpu.matmul %40, %42, %cst_19 {dimension_numbers = #tpu.dot_dimension_numbers<[1], [0], [0], [1], [0, 0, 1, 1], [], []>} : vector<32x128xbf16>, vector<128x128xbf16>, vector<32x128xf32> -> vector<32x128xf32>
    %44 = vector.shape_cast %32 : vector<2x16x128xf32> to vector<32x128xf32>
    %45 = arith.truncf %44 : vector<32x128xf32> to vector<32x128xbf16>
    %c1_20 = arith.constant 1 : index
    %c0_21 = arith.constant 0 : index
    %c0_22 = arith.constant 0 : index
    %46 = vector.load %arg5[%c1_20, %c0_21, %c0_22] : memref<3x128x128xbf16, #tpu.memory_space<vmem>>, vector<1x128x128xbf16>
    %47 = vector.shape_cast %46 : vector<1x128x128xbf16> to vector<128x128xbf16>
    %cst_23 = arith.constant dense<0.000000e+00> : vector<32x128xf32>
    %48 = tpu.matmul %45, %47, %cst_23 {dimension_numbers = #tpu.dot_dimension_numbers<[1], [0], [0], [1], [0, 0, 1, 1], [], []>} : vector<32x128xbf16>, vector<128x128xbf16>, vector<32x128xf32> -> vector<32x128xf32>
    %49 = arith.addf %43, %48 : vector<32x128xf32>
    %50 = vector.shape_cast %38 : vector<2x16x128xf32> to vector<32x128xf32>
    %51 = arith.truncf %50 : vector<32x128xf32> to vector<32x128xbf16>
    %c2_24 = arith.constant 2 : index
    %c0_25 = arith.constant 0 : index
    %c0_26 = arith.constant 0 : index
    %52 = vector.load %arg5[%c2_24, %c0_25, %c0_26] : memref<3x128x128xbf16, #tpu.memory_space<vmem>>, vector<1x128x128xbf16>
    %53 = vector.shape_cast %52 : vector<1x128x128xbf16> to vector<128x128xbf16>
    %cst_27 = arith.constant dense<0.000000e+00> : vector<32x128xf32>
    %54 = tpu.matmul %51, %53, %cst_27 {dimension_numbers = #tpu.dot_dimension_numbers<[1], [0], [0], [1], [0, 0, 1, 1], [], []>} : vector<32x128xbf16>, vector<128x128xbf16>, vector<32x128xf32> -> vector<32x128xf32>
    %55 = arith.addf %49, %54 : vector<32x128xf32>
    %c0_28 = arith.constant 0 : index
    %c0_29 = arith.constant 0 : index
    %56 = vector.load %arg6[%c0_28, %c0_29] : memref<1x128xf32, #tpu.memory_space<vmem>>, vector<1x128xf32>
    %57 = vector.broadcast %56 : vector<1x128xf32> to vector<32x128xf32>
    %58 = arith.mulf %55, %57 : vector<32x128xf32>
    %c0_30 = arith.constant 0 : index
    %c0_31 = arith.constant 0 : index
    %59 = vector.load %arg7[%c0_30, %c0_31] : memref<1x128xf32, #tpu.memory_space<vmem>>, vector<1x128xf32>
    %60 = vector.broadcast %59 : vector<1x128xf32> to vector<32x128xf32>
    %61 = arith.addf %58, %60 : vector<32x128xf32>
    %62 = vector.shape_cast %61 : vector<32x128xf32> to vector<2x16x128xf32>
    %63 = arith.addf %62, %0 : vector<2x16x128xf32>
    %cst_32 = arith.constant 0.000000e+00 : f32
    %64 = vector.broadcast %cst_32 : f32 to vector<2x16x128xf32>
    %65 = arith.maximumf %63, %64 : vector<2x16x128xf32>
    %c0_33 = arith.constant 0 : index
    %c0_34 = arith.constant 0 : index
    %c0_35 = arith.constant 0 : index
    %66 = vector.load %arg8[%c0_33, %c0_34, %c0_35] : memref<2x16x128xf32, #tpu.memory_space<vmem>>, vector<2x16x128xf32>
    tpu.vector_store %arg8[%c0_33, %c0_34, %c0_35], %65 {strides = array<i32>} : memref<2x16x128xf32, #tpu.memory_space<vmem>>, vector<2x16x128xf32>,
    return
  }
  func.func @transform_0(%arg0: i32) -> (i32, i32, i32) {
    %c0_i32 = arith.constant 0 : i32
    %c0_i32_0 = arith.constant 0 : i32
    %c0_i32_1 = arith.constant 0 : i32
    return %arg0, %c0_i32, %c0_i32_0 : i32, i32, i32
  }
  func.func @transform_1(%arg0: i32) -> (i32, i32, i32) {
    %c0_i32 = arith.constant 0 : i32
    %c0_i32_0 = arith.constant 0 : i32
    %c0_i32_1 = arith.constant 0 : i32
    %c0_i32_2 = arith.constant 0 : i32
    return %c0_i32, %c0_i32_0, %c0_i32_1 : i32, i32, i32
  }
  func.func @transform_2(%arg0: i32) -> (i32, i32) {
    %c0_i32 = arith.constant 0 : i32
    %c0_i32_0 = arith.constant 0 : i32
    %c0_i32_1 = arith.constant 0 : i32
    return %c0_i32, %c0_i32_0 : i32, i32
  }
  func.func @transform_3(%arg0: i32) -> (i32, i32) {
    %c0_i32 = arith.constant 0 : i32
    %c0_i32_0 = arith.constant 0 : i32
    %c0_i32_1 = arith.constant 0 : i32
    return %c0_i32, %c0_i32_0 : i32, i32
  }
  func.func @transform_4(%arg0: i32) -> (i32, i32, i32) {
    %c0_i32 = arith.constant 0 : i32
    %c0_i32_0 = arith.constant 0 : i32
    %c0_i32_1 = arith.constant 0 : i32
    %c0_i32_2 = arith.constant 0 : i32
    return %c0_i32, %c0_i32_0, %c0_i32_1 : i32, i32, i32
  }
  func.func @transform_5(%arg0: i32) -> (i32, i32) {
    %c0_i32 = arith.constant 0 : i32
    %c0_i32_0 = arith.constant 0 : i32
    %c0_i32_1 = arith.constant 0 : i32
    return %c0_i32, %c0_i32_0 : i32, i32
  }
  func.func @transform_6(%arg0: i32) -> (i32, i32) {
    %c0_i32 = arith.constant 0 : i32
    %c0_i32_0 = arith.constant 0 : i32
    %c0_i32_1 = arith.constant 0 : i32
    return %c0_i32, %c0_i32_0 : i32, i32
  }
  func.func @transform_7(%arg0: i32) -> (i32, i32, i32) {
    %c0_i32 = arith.constant 0 : i32
    %c0_i32_0 = arith.constant 0 : i32
    %c0_i32_1 = arith.constant 0 : i32
    return %arg0, %c0_i32, %c0_i32_0 : i32, i32, i32
  }
}

</mosaic_0001>

<bundles_post_ra>
// kernel: tpu_custom_call.1
= control target key start
LH: loop header
LB: loop body
LE: loop exit
PB: predicated region body
PF: predicated region fallthrough
CT: control target
= control target key end

     0   :  { %12 = vsyncpa [#allocation3], 0  ;;  %s1477_s0 = inlined_call_operand.hbm [shape: f32[2,16,128], index: 0, kind: input, shape index: {}]   ;;  %s1478_s1 = inlined_call_operand.hbm [shape: bf16[3,128,128], index: 1, kind: input, shape index: {}]   ;;  %s1479_s2 = inlined_call_operand.vmem [shape: f32[1,128], index: 2, kind: input, shape index: {}]   ;;  %s1480_s3 = inlined_call_operand.vmem [shape: f32[1,128], index: 3, kind: input, shape index: {}]   ;;  %s1481_s4 = inlined_call_operand.hbm [shape: bf16[3,128,128], index: 4, kind: input, shape index: {}]   ;;  %s1482_s5 = inlined_call_operand.vmem [shape: f32[1,128], index: 5, kind: input, shape index: {}]   ;;  %s1483_s6 = inlined_call_operand.vmem [shape: f32[1,128], index: 6, kind: input, shape index: {}]   ;;  %s1484_s7 = inlined_call_operand.hbm [shape: f32[2,16,128], index: 7, kind: output, shape index: {}]  }
   0x1   :  { %13 = vsyncpa [#allocation6], 0 }
   0x2   :  { %14 = vsyncpa [#allocation4], 0  ;;  %s1317_s24 = smov [#allocation5]   ;;  %s1223_s28 = scalar_lea.hbm %s1478_s1, 3072 }
   0x3   :  { %s32_s25 = sshll.u32 %s1317_s24, 4  ;;  %p1224_p0 = scmp.ne.s32.totalorder %s1478_s1, %s1223_s28  ;;  %s33_s25 = int_to_ptr.vmem [resolvable:$true] %s32_s25 }
   0x4   :  { %p1227_p1 = scmp.lt.u32.totalorder %s1223_s28, %s1478_s1 }
   0x6   :  { %p1229_p2 = pnand %p1227_p1, %p1224_p0 }
   0x8   :  { %1232 = shalt.err (!%p1229_p2)
}
   0x9   :  { %s1233_s10 = scalar_lea.vmem %s33_s25, 3072  ;;  %p1238_p4 = scmp.lt.s32.totalorder %s33_s25, %s33_s25 }
   0xa   :  { %p1234_p3 = scmp.ne.s32.totalorder %s33_s25, %s1233_s10  ;;  %p1239_p5 = scmp.lt.s32.totalorder %s1233_s10, %s1233_s10 }
   0xc   :  { %p1240_p6 = por %p1239_p5, %p1238_p4 }
   0xe   :  { %p1241_p7 = pnand %p1240_p6, %p1234_p3 }
  0x10   :  { %1244 = shalt.err (!%p1241_p7)
}
  0x11   :  { %s1318_s11 = smov 64   ;;  %s1319_s12 = smov 4  }
  0x12   :  { %38 = dma.hbm_to_vmem [thread:$0]  %s1478_s1, 3072, %s33_s25, [#allocation6], %s1318_s11, %s1318_s11, %s1319_s12  }
  0x13   :  { %s1320_s15 = smov [#allocation2]   ;;  %s1245_s19 = scalar_lea.hbm %s1477_s0, 512 }
  0x14   :  { %s20_s16 = sshll.u32 %s1320_s15, 4  ;;  %p1246_p8 = scmp.ne.s32.totalorder %s1477_s0, %s1245_s19  ;;  %s21_s16 = int_to_ptr.vmem [resolvable:$true] %s20_s16 }
  0x15   :  { %p1249_p9 = scmp.lt.u32.totalorder %s1245_s19, %s1477_s0 }
  0x17   :  { %p1251_p10 = pnand %p1249_p9, %p1246_p8 }
  0x19   :  { %1254 = shalt.err (!%p1251_p10)
}
  0x1a   :  { %s1255_s24 = scalar_lea.vmem %s21_s16, 512  ;;  %p1260_p12 = scmp.lt.s32.totalorder %s21_s16, %s21_s16 }
  0x1b   :  { %p1256_p11 = scmp.ne.s32.totalorder %s21_s16, %s1255_s24  ;;  %p1261_p13 = scmp.lt.s32.totalorder %s1255_s24, %s1255_s24 }
  0x1d   :  { %p1262_p0 = por %p1261_p13, %p1260_p12 }
  0x1f   :  { %p1263_p1 = pnand %p1262_p0, %p1256_p11 }
  0x21   :  { %1266 = shalt.err (!%p1263_p1)
}
  0x22   :  { %s1321_s1 = smov 128   ;;  %s1322_s25 = smov 8  }
  0x23   :  { %26 = dma.hbm_to_vmem [thread:$0]  %s1477_s0, 512, %s21_s16, [#allocation3], %s1321_s1, %s1321_s1, %s1322_s25  }
  0x24   :  { %s1323_s28 = smov [#allocation7]   ;;  %s1267_s9 = scalar_lea.hbm %s1481_s4, 3072 }
  0x25   :  { %s48_s29 = sshll.u32 %s1323_s28, 4  ;;  %p1268_p2 = scmp.ne.s32.totalorder %s1481_s4, %s1267_s9  ;;  %s49_s29 = int_to_ptr.vmem [resolvable:$true] %s48_s29 }
  0x26   :  { %p1271_p3 = scmp.lt.u32.totalorder %s1267_s9, %s1481_s4 }
  0x28   :  { %p1273_p4 = pnand %p1271_p3, %p1268_p2 }
  0x2a   :  { %1276 = shalt.err (!%p1273_p4)
}
  0x2b   :  { %s1277_s17 = scalar_lea.vmem %s49_s29, 3072  ;;  %p1282_p6 = scmp.lt.s32.totalorder %s49_s29, %s49_s29 }
  0x2c   :  { %p1278_p5 = scmp.ne.s32.totalorder %s49_s29, %s1277_s17  ;;  %p1283_p7 = scmp.lt.s32.totalorder %s1277_s17, %s1277_s17 }
  0x2e   :  { %p1284_p8 = por %p1283_p7, %p1282_p6 }
  0x30   :  { %p1285_p9 = pnand %p1284_p8, %p1278_p5 }
  0x32   :  { %1288 = shalt.err (!%p1285_p9)
}
  0x33   :  { %54 = dma.hbm_to_vmem [thread:$0]  %s1481_s4, 3072, %s49_s29, [#allocation6], %s1318_s11, %s1318_s11, %s1319_s12  }
  0x34   :  { %1311 = dma.done.wait [#allocation3], 512  }
  0x35   :  { %1312 = vsyncadd [#allocation3], 4294966784 }
  0x36   :  { %1313 = dma.done.wait [#allocation6], 6144  }
  0x37   :  { %1314 = vsyncadd [#allocation6], 4294961152  ;;  %v1175_v0 = vld [vmem:[#allocation5 + $0x40] sm:$0xff]   ;;  %v1176_v1 = vld [vmem:[#allocation5 + $0x48] sm:$0xff]   ;;  %vm81_vm0 = vcmask 1040384   ;;  %vm92_vm1 = vcmask 1046528  }
  0x38   :  { %1031 = vmatprep.subr.bf16.mxu0 %v1175_v0  ;;  %v1177_v2 = vld [vmem:[#allocation5 + $0x50] sm:$0xff]   ;;  %v1178_v3 = vld [vmem:[#allocation5 + $0x58] sm:$0xff]   ;;  %v1410_v4 = vld [vmem:[#allocation2] sm:$0xff] }
  0x39   :  { %1032 = vmatpush3.bf16.msra.mxu0 %v1175_v0  ;;  %v1412_v5 = vld [vmem:[#allocation2 + $0x8] sm:$0xff]  ;;  %v1179_v7 = vld [vmem:[#allocation5 + $0x60] sm:$0xff]   ;;  %v1181_v9 = vld [vmem:[#allocation5 + $0x70] sm:$0xff]   ;;  %v82_v12 = vrot.slane %v1410_v4, 7  ;;  %v93_v33 = vrot.slane %v1410_v4, 1 }
  0x3a   :  { %1033 = vmatprep.subr.bf16.mxu0 %v1176_v1  ;;  %v125_v6 = vpack.c.bf16 %v1412_v5, %v1410_v4  ;;  %v1180_v8 = vld [vmem:[#allocation5 + $0x68] sm:$0xff]   ;;  %v1182_v10 = vld [vmem:[#allocation5 + $0x78] sm:$0xff]   ;;  %v75_v11 = vrot.slane %v1412_v5, 7  ;;  %v1418_v13 = vld [vmem:[#allocation2 + $0x10] sm:$0xff]  ;;  %v94_v34 = vrot.slane %v1412_v5, 1 }
  0x3b   :  { %v1183_v14 = vld [vmem:[#allocation5] sm:$0xff]   ;;  %v1420_v15 = vld [vmem:[#allocation2 + $0x18] sm:$0xff]  ;;  %v1200_v19 = vld [vmem:[#allocation7 + $0x48] sm:$0xff]   ;;  %v84_v32 = vrot.slane %v1418_v13, 7  ;;  %v96_v49 = vrot.slane %v1418_v13, 1 }
  0x3c   :  { %1047 = vmatprep.mubr.bf16.mxu0 %v125_v6  ;;  %v1199_v16 = vld [vmem:[#allocation7 + $0x40] sm:$0xff]   ;;  %v83_v17 = vsel %vm81_vm0, %v82_v12, %v75_v11  ;;  %v90_v18 = vsel %vm81_vm0, %v75_v11, %v82_v12  ;;  %v126_v20 = vpack.c.bf16 %v1420_v15, %v1418_v13  ;;  %v1184_v21 = vld [vmem:[#allocation5 + $0x8] sm:$0xff]   ;;  %v1201_v23 = vld [vmem:[#allocation7 + $0x50] sm:$0xff]   ;;  %v76_v31 = vrot.slane %v1420_v15, 7 }
  0x3d   :  { %1034 = vmatpush3.bf16.msra.mxu0 %v1176_v1  ;;  %1091 = vmatprep.subr.bf16.mxu1 %v1199_v16  ;;  %v107_v22 = vpack.c.bf16 %v83_v17, %v90_v18  ;;  %v1202_v24 = vld [vmem:[#allocation7 + $0x58] sm:$0xff]   ;;  %v1185_v25 = vld [vmem:[#allocation5 + $0x10] sm:$0xff]   ;;  %v1203_v26 = vld [vmem:[#allocation7 + $0x60] sm:$0xff]   ;;  %v95_v39 = vsel %vm92_vm1, %v93_v33, %v94_v34  ;;  %v105_v40 = vsel %vm92_vm1, %v94_v34, %v93_v33  ;;  %v97_v50 = vrot.slane %v1420_v15, 1 }
  0x3e   :  { %1035 = vmatprep.subr.bf16.mxu0 %v1177_v2  ;;  %1092 = vmatpush3.bf16.msra.mxu1 %v1199_v16  ;;  %v1186_v27 = vld [vmem:[#allocation5 + $0x18] sm:$0xff]   ;;  %v1187_v28 = vld [vmem:[#allocation5 + $0x20] sm:$0xff]   ;;  %v1188_v29 = vld [vmem:[#allocation5 + $0x28] sm:$0xff]   ;;  %v85_v36 = vsel %vm81_vm0, %v84_v32, %v76_v31  ;;  %v91_v37 = vsel %vm81_vm0, %v76_v31, %v84_v32  ;;  %v338_v42 = vpack.c.bf16 %v105_v40, %v95_v39 }
  0x3f   :  { %1093 = vmatprep.subr.bf16.mxu1 %v1200_v19  ;;  %v1189_v30 = vld [vmem:[#allocation5 + $0x30] sm:$0xff]   ;;  %v1190_v35 = vld [vmem:[#allocation5 + $0x38] sm:$0xff]   ;;  %v1191_v38 = vld [vmem:[#allocation5 + $0x80] sm:$0xff]   ;;  %v108_v41 = vpack.c.bf16 %v85_v36, %v91_v37  ;;  %v98_v52 = vsel %vm92_vm1, %v96_v49, %v97_v50  ;;  %v106_v53 = vsel %vm92_vm1, %v97_v50, %v96_v49 }
  0x40   :  { %v1192_v43 = vld [vmem:[#allocation5 + $0x88] sm:$0xff]   ;;  %v1193_v44 = vld [vmem:[#allocation5 + $0x90] sm:$0xff]   ;;  %v1194_v45 = vld [vmem:[#allocation5 + $0x98] sm:$0xff]   ;;  %v339_v54 = vpack.c.bf16 %v106_v53, %v98_v52 }
  0x41   :  { %1036 = vmatpush3.bf16.msra.mxu0 %v1177_v2  ;;  %v1195_v46 = vld [vmem:[#allocation5 + $0xa0] sm:$0xff]   ;;  %v1196_v47 = vld [vmem:[#allocation5 + $0xa8] sm:$0xff]   ;;  %v1197_v48 = vld [vmem:[#allocation5 + $0xb0] sm:$0xff]  }
  0x42   :  { %1037 = vmatprep.subr.bf16.mxu0 %v1178_v3  ;;  %1094 = vmatpush3.bf16.msra.mxu1 %v1200_v19  ;;  %v1198_v51 = vld [vmem:[#allocation5 + $0xb8] sm:$0xff]   ;;  %v1204_v55 = vld [vmem:[#allocation7 + $0x68] sm:$0xff]   ;;  %v1205_v56 = vld [vmem:[#allocation7 + $0x70] sm:$0xff]  }
  0x43   :  { %1095 = vmatprep.subr.bf16.mxu1 %v1201_v23  ;;  %v1206_v57 = vld [vmem:[#allocation7 + $0x78] sm:$0xff]   ;;  %v1207_v58 = vld [vmem:[#allocation7] sm:$0xff]   ;;  %v1209_v40 = vld [vmem:[#allocation7 + $0x10] sm:$0xff]  }
  0x44   :  { %v943_v59 = vld [vmem:[%s1479_s2] ss:$0 sm:$0xff]  ;;  %v1218_v49 = vld [vmem:[#allocation7 + $0x98] sm:$0xff]   ;;  %v1221_v52 = vld [vmem:[#allocation7 + $0xb0] sm:$0xff]  }
  0x45   :  { %1038 = vmatpush3.bf16.msra.mxu0 %v1178_v3  ;;  %v944_v61 = vld [vmem:[%s1480_s3] ss:$0 sm:$0xff]  ;;  %v1222_v53 = vld [vmem:[#allocation7 + $0xb8] sm:$0xff]  }
  0x46   :  { %1039 = vmatprep.subr.bf16.mxu0 %v1179_v7  ;;  %1096 = vmatpush3.bf16.msra.mxu1 %v1201_v23  ;;  %v1219_v50 = vld [vmem:[#allocation7 + $0xa0] sm:$0xff]  }
  0x47   :  { %1097 = vmatprep.subr.bf16.mxu1 %v1202_v24 }
  0x49   :  { %1040 = vmatpush3.bf16.msra.mxu0 %v1179_v7 }
  0x4a   :  { %1041 = vmatprep.subr.bf16.mxu0 %v1180_v8  ;;  %1098 = vmatpush3.bf16.msra.mxu1 %v1202_v24 }
  0x4b   :  { %1099 = vmatprep.subr.bf16.mxu1 %v1203_v26 }
  0x4d   :  { %1042 = vmatpush3.bf16.msra.mxu0 %v1180_v8 }
  0x4e   :  { %1043 = vmatprep.subr.bf16.mxu0 %v1181_v9  ;;  %1100 = vmatpush3.bf16.msra.mxu1 %v1203_v26 }
  0x4f   :  { %1101 = vmatprep.subr.bf16.mxu1 %v1204_v55 }
  0x51   :  { %1044 = vmatpush3.bf16.msra.mxu0 %v1181_v9 }
  0x52   :  { %1045 = vmatprep.subr.bf16.mxu0 %v1182_v10  ;;  %1102 = vmatpush3.bf16.msra.mxu1 %v1204_v55 }
  0x53   :  { %1103 = vmatprep.subr.bf16.mxu1 %v1205_v56 }
  0x55   :  { %1046 = vmatpush3.bf16.msra.mxu0 %v1182_v10 }
  0x56   :  { %1051 = vmatprep.subr.bf16.mxu0 %v1183_v14  ;;  %1104 = vmatpush3.bf16.msra.mxu1 %v1205_v56  ;;  %v970_v56 = vld [vmem:[%s1483_s6] ss:$0 sm:$0xff] }
  0x57   :  { %1105 = vmatprep.subr.bf16.mxu1 %v1206_v57 }
  0x58   :  { %1048 = vmatmul.mubr.bf16.vlgmr.msra.gmra.mrb[0].mxu0 %v126_v20 }
  0x59   :  { %1052 = vmatpush3.bf16.msra.mxu0 %v1183_v14  ;;  %1067 = vmatprep.mubr.bf16.mxu0 %v107_v22 }
  0x5a   :  { %1053 = vmatprep.subr.bf16.mxu0 %v1184_v21  ;;  %1106 = vmatpush3.bf16.msra.mxu1 %v1206_v57 }
  0x5b   :  { %1111 = vmatprep.subr.bf16.mxu1 %v1207_v58 }
  0x5d   :  { %1054 = vmatpush3.bf16.msra.mxu0 %v1184_v21 }
  0x5e   :  { %1055 = vmatprep.subr.bf16.mxu0 %v1185_v25 }
  0x61   :  { %1056 = vmatpush3.bf16.msra.mxu0 %v1185_v25 }
  0x62   :  { %1057 = vmatprep.subr.bf16.mxu0 %v1186_v27 }
  0x65   :  { %1058 = vmatpush3.bf16.msra.mxu0 %v1186_v27  ;;  %v1208_v27 = vld [vmem:[#allocation7 + $0x8] sm:$0xff]  }
  0x66   :  { %1059 = vmatprep.subr.bf16.mxu0 %v1187_v28 }
  0x69   :  { %1060 = vmatpush3.bf16.msra.mxu0 %v1187_v28 }
  0x6a   :  { %1061 = vmatprep.subr.bf16.mxu0 %v1188_v29 }
  0x6d   :  { %1062 = vmatpush3.bf16.msra.mxu0 %v1188_v29 }
  0x6e   :  { %1063 = vmatprep.subr.bf16.mxu0 %v1189_v30 }
  0x71   :  { %1064 = vmatpush3.bf16.msra.mxu0 %v1189_v30 }
  0x72   :  { %1065 = vmatprep.subr.bf16.mxu0 %v1190_v35 }
  0x75   :  { %1066 = vmatpush3.bf16.msra.mxu0 %v1190_v35 }
  0x76   :  { %1071 = vmatprep.subr.bf16.mxu0 %v1191_v38 }
  0x78   :  { %1068 = vmatmul.mubr.bf16.vlgmr.msra.gmra.mrb[0].mxu0 %v108_v41  ;;  %v1210_v41 = vld [vmem:[#allocation7 + $0x18] sm:$0xff]  }
  0x79   :  { %1072 = vmatpush3.bf16.msra.mxu0 %v1191_v38  ;;  %1087 = vmatprep.mubr.bf16.mxu0 %v338_v42  ;;  %v1211_v42 = vld [vmem:[#allocation7 + $0x20] sm:$0xff]  }
  0x7a   :  { %1073 = vmatprep.subr.bf16.mxu0 %v1192_v43 }
  0x7d   :  { %1074 = vmatpush3.bf16.msra.mxu0 %v1192_v43  ;;  %v1212_v43 = vld [vmem:[#allocation7 + $0x28] sm:$0xff]  }
  0x7e   :  { %1075 = vmatprep.subr.bf16.mxu0 %v1193_v44 }
  0x81   :  { %1076 = vmatpush3.bf16.msra.mxu0 %v1193_v44  ;;  %v1213_v44 = vld [vmem:[#allocation7 + $0x30] sm:$0xff]  }
  0x82   :  { %1077 = vmatprep.subr.bf16.mxu0 %v1194_v45 }
  0x85   :  { %1078 = vmatpush3.bf16.msra.mxu0 %v1194_v45  ;;  %v1214_v45 = vld [vmem:[#allocation7 + $0x38] sm:$0xff]  }
  0x86   :  { %1079 = vmatprep.subr.bf16.mxu0 %v1195_v46 }
  0x89   :  { %1080 = vmatpush3.bf16.msra.mxu0 %v1195_v46  ;;  %v1215_v46 = vld [vmem:[#allocation7 + $0x80] sm:$0xff]  }
  0x8a   :  { %1081 = vmatprep.subr.bf16.mxu0 %v1196_v47 }
  0x8d   :  { %1082 = vmatpush3.bf16.msra.mxu0 %v1196_v47  ;;  %v1216_v47 = vld [vmem:[#allocation7 + $0x88] sm:$0xff]  }
  0x8e   :  { %1083 = vmatprep.subr.bf16.mxu0 %v1197_v48 }
  0x91   :  { %1084 = vmatpush3.bf16.msra.mxu0 %v1197_v48  ;;  %v1217_v48 = vld [vmem:[#allocation7 + $0x90] sm:$0xff]  }
  0x92   :  { %1085 = vmatprep.subr.bf16.mxu0 %v1198_v51 }
  0x95   :  { %1086 = vmatpush3.bf16.msra.mxu0 %v1198_v51  ;;  %v1220_v51 = vld [vmem:[#allocation7 + $0xa8] sm:$0xff]  }
  0x98   :  { %1088 = vmatmul.mubr.bf16.vlgmr.msra.gmra.mrb[0].mxu0 %v339_v54  ;;  %v969_v54 = vld [vmem:[%s1482_s5] ss:$0 sm:$0xff]  ;;  %s1324_s5 = smov [#allocation8]  }
  0x99   :  { %s906_s6 = sshll.u32 %s1324_s5, 4  ;;  %s907_s6 = int_to_ptr.vmem [resolvable:$true] %s906_s6 }
  0x9a   :  { %s1289_s21 = scalar_lea.vmem %s907_s6, 512  ;;  %p1294_p11 = scmp.lt.s32.totalorder %s907_s6, %s907_s6 }
  0x9b   :  { %p1290_p10 = scmp.ne.s32.totalorder %s907_s6, %s1289_s21  ;;  %p1295_p12 = scmp.lt.s32.totalorder %s1289_s21, %s1289_s21 }
  0x9d   :  { %p1296_p13 = por %p1295_p12, %p1294_p11 }
  0x9f   :  { %p1297_p0 = pnand %p1296_p13, %p1290_p10 }
 0x16b   :  { %v1089_v60 = vpop.f32.mrb[0].mxu0 }
 0x16c   :  { %v467_v62 = vmul.f32 %v1089_v60, %v943_v59  ;;  %v439_v63 = vpop.f32.mrb[1].mxu0 }
 0x16d   :  { %v465_v0 = vmul.f32 %v943_v59, %v439_v63  ;;  %v1090_v1 = vpop.f32.mrb[2].mxu0 }
 0x16e   :  { %v478_v2 = vadd.f32 %v944_v61, %v467_v62  ;;  %v468_v3 = vmul.f32 %v1090_v1, %v943_v59  ;;  %v442_v6 = vpop.f32.mrb[3].mxu0 }
 0x16f   :  { %v476_v7 = vadd.f32 %v944_v61, %v465_v0  ;;  %v466_v8 = vmul.f32 %v943_v59, %v442_v6 }
 0x170   :  { %v482_v9 = vmax.f32 %v478_v2, 0.0  ;;  %v479_v10 = vadd.f32 %v944_v61, %v468_v3 }
 0x171   :  { %v480_v11 = vmax.f32 %v476_v7, 0.0  ;;  %v477_v12 = vadd.f32 %v944_v61, %v466_v8 }
 0x172   :  { %v483_v14 = vmax.f32 %v479_v10, 0.0  ;;  %v494_v16 = vrot.slane %v482_v9, 7  ;;  %v505_v17 = vrot.slane %v482_v9, 1 }
 0x173   :  { %v481_v18 = vmax.f32 %v477_v12, 0.0  ;;  %v492_v19 = vrot.slane %v480_v11, 7  ;;  %v502_v23 = vrot.slane %v480_v11, 1 }
 0x174   :  { %v487_v20 = vrot.slane %v483_v14, 7  ;;  %v506_v21 = vrot.slane %v483_v14, 1  ;;  %v535_v22 = vpack.c.bf16 %v483_v14, %v482_v9 }
 0x175   :  { %v486_v24 = vrot.slane %v481_v18, 7  ;;  %v503_v25 = vrot.slane %v481_v18, 1  ;;  %v534_v26 = vpack.c.bf16 %v481_v18, %v480_v11 }
 0x176   :  { %v495_v28 = vsel %vm81_vm0, %v494_v16, %v487_v20  ;;  %v501_v29 = vsel %vm81_vm0, %v487_v20, %v494_v16  ;;  %v507_v30 = vsel %vm92_vm1, %v505_v17, %v506_v21  ;;  %v515_v31 = vsel %vm92_vm1, %v506_v21, %v505_v17 }
 0x177   :  { %1107 = vmatprep.mubr.bf16.mxu1 %v534_v26  ;;  %v493_v32 = vsel %vm81_vm0, %v492_v19, %v486_v24  ;;  %v500_v33 = vsel %vm81_vm0, %v486_v24, %v492_v19  ;;  %v517_v34 = vpack.c.bf16 %v495_v28, %v501_v29  ;;  %v504_v35 = vsel %vm92_vm1, %v502_v23, %v503_v25 }
 0x178   :  { %1108 = vmatmul.mubr.bf16.vlgmr.msra.gmra.mrb[0].mxu1 %v535_v22  ;;  %v516_v36 = vpack.c.bf16 %v493_v32, %v500_v33  ;;  %v514_v37 = vsel %vm92_vm1, %v503_v25, %v502_v23  ;;  %v748_v38 = vpack.c.bf16 %v515_v31, %v507_v30 }
 0x179   :  { %1112 = vmatpush3.bf16.msra.mxu1 %v1207_v58  ;;  %v747_v39 = vpack.c.bf16 %v514_v37, %v504_v35 }
 0x17a   :  { %1127 = vmatprep.mubr.bf16.mxu1 %v516_v36  ;;  %1113 = vmatprep.subr.bf16.mxu1 %v1208_v27 }
 0x17d   :  { %1114 = vmatpush3.bf16.msra.mxu1 %v1208_v27 }
 0x17e   :  { %1115 = vmatprep.subr.bf16.mxu1 %v1209_v40 }
 0x181   :  { %1116 = vmatpush3.bf16.msra.mxu1 %v1209_v40 }
 0x182   :  { %1117 = vmatprep.subr.bf16.mxu1 %v1210_v41 }
 0x185   :  { %1118 = vmatpush3.bf16.msra.mxu1 %v1210_v41 }
 0x186   :  { %1119 = vmatprep.subr.bf16.mxu1 %v1211_v42 }
 0x189   :  { %1120 = vmatpush3.bf16.msra.mxu1 %v1211_v42 }
 0x18a   :  { %1121 = vmatprep.subr.bf16.mxu1 %v1212_v43 }
 0x18d   :  { %1122 = vmatpush3.bf16.msra.mxu1 %v1212_v43 }
 0x18e   :  { %1123 = vmatprep.subr.bf16.mxu1 %v1213_v44 }
 0x191   :  { %1124 = vmatpush3.bf16.msra.mxu1 %v1213_v44 }
 0x192   :  { %1125 = vmatprep.subr.bf16.mxu1 %v1214_v45 }
 0x195   :  { %1126 = vmatpush3.bf16.msra.mxu1 %v1214_v45 }
 0x196   :  { %1131 = vmatprep.subr.bf16.mxu1 %v1215_v46 }
 0x198   :  { %1128 = vmatmul.mubr.bf16.vlgmr.msra.gmra.mrb[0].mxu1 %v517_v34 }
 0x199   :  { %1132 = vmatpush3.bf16.msra.mxu1 %v1215_v46  ;;  %1147 = vmatprep.mubr.bf16.mxu1 %v747_v39 }
 0x19a   :  { %1133 = vmatprep.subr.bf16.mxu1 %v1216_v47 }
 0x19d   :  { %1134 = vmatpush3.bf16.msra.mxu1 %v1216_v47 }
 0x19e   :  { %1135 = vmatprep.subr.bf16.mxu1 %v1217_v48 }
 0x1a1   :  { %1136 = vmatpush3.bf16.msra.mxu1 %v1217_v48 }
 0x1a2   :  { %1137 = vmatprep.subr.bf16.mxu1 %v1218_v49 }
 0x1a5   :  { %1138 = vmatpush3.bf16.msra.mxu1 %v1218_v49 }
 0x1a6   :  { %1139 = vmatprep.subr.bf16.mxu1 %v1219_v50 }
 0x1a9   :  { %1140 = vmatpush3.bf16.msra.mxu1 %v1219_v50 }
 0x1aa   :  { %1141 = vmatprep.subr.bf16.mxu1 %v1220_v51 }
 0x1ad   :  { %1142 = vmatpush3.bf16.msra.mxu1 %v1220_v51 }
 0x1ae   :  { %1143 = vmatprep.subr.bf16.mxu1 %v1221_v52 }
 0x1b1   :  { %1144 = vmatpush3.bf16.msra.mxu1 %v1221_v52 }
 0x1b2   :  { %1145 = vmatprep.subr.bf16.mxu1 %v1222_v53 }
 0x1b5   :  { %1146 = vmatpush3.bf16.msra.mxu1 %v1222_v53 }
 0x1b8   :  { %1148 = vmatmul.mubr.bf16.vlgmr.msra.gmra.mrb[0].mxu1 %v748_v38 }
 0x28b   :  { %v1149_v55 = vpop.f32.mrb[0].mxu1 }
 0x28c   :  { %v876_v57 = vmul.f32 %v1149_v55, %v969_v54  ;;  %v848_v58 = vpop.f32.mrb[1].mxu1 }
 0x28d   :  { %v874_v59 = vmul.f32 %v969_v54, %v848_v58  ;;  %v1150_v60 = vpop.f32.mrb[2].mxu1 }
 0x28e   :  { %v887_v61 = vadd.f32 %v970_v56, %v876_v57  ;;  %v877_v62 = vmul.f32 %v1150_v60, %v969_v54  ;;  %v851_v63 = vpop.f32.mrb[3].mxu1 }
 0x28f   :  { %v885_v0 = vadd.f32 %v970_v56, %v874_v59  ;;  %v875_v1 = vmul.f32 %v969_v54, %v851_v63 }
 0x290   :  { %v891_v2 = vadd.f32 %v887_v61, %v1418_v13  ;;  %v888_v3 = vadd.f32 %v970_v56, %v877_v62 }
 0x291   :  { %v889_v6 = vadd.f32 %v885_v0, %v1410_v4  ;;  %v886_v7 = vadd.f32 %v970_v56, %v875_v1 }
 0x292   :  { %v895_v8 = vmax.f32 %v891_v2, 0.0  ;;  %v892_v9 = vadd.f32 %v888_v3, %v1420_v15 }
 0x293   :  { %v893_v10 = vmax.f32 %v889_v6, 0.0  ;;  %v890_v11 = vadd.f32 %v886_v7, %v1412_v5 }
 0x294   :  { %899 = vst [vmem:[#allocation8 + $0x10] sm:$0xff] %v895_v8  ;;  %v896_v12 = vmax.f32 %v892_v9, 0.0 }
 0x295   :  { %897 = vst [vmem:[#allocation8] sm:$0xff] %v893_v10  ;;  %v894_v14 = vmax.f32 %v890_v11, 0.0 }
 0x296   :  { %900 = vst [vmem:[#allocation8 + $0x18] sm:$0xff] %v896_v12 }
 0x297   :  { %898 = vst [vmem:[#allocation8 + $0x8] sm:$0xff] %v894_v14 }
 0x298   :  { %1300 = shalt.err (!%p1297_p0)
}
 0x299   :  { %s1301_s24 = scalar_lea.hbm %s1484_s7, 512 }
 0x29a   :  { %p1302_p1 = scmp.ne.s32.totalorder %s1484_s7, %s1301_s24  ;;  %p1305_p2 = scmp.lt.u32.totalorder %s1301_s24, %s1484_s7 }
 0x29c   :  { %p1307_p3 = pnand %p1305_p2, %p1302_p1 }
 0x29e   :  { %1310 = shalt.err (!%p1307_p3)
}
 0x29f   :  { %912 = dma.vmem_to_hbm [thread:$0]  %s907_s6, 512, %s1484_s7, [#allocation4], %s1321_s1, %s1321_s1, %s1322_s25  }
 0x2a0   :  { %1315 = dma.done.wait [#allocation4], 512  }
 0x2a1   :  { %1316 = vsyncadd [#allocation4], 4294966784 }
 0x2a2   :  { %916 = vsyncpa [#allocation3], 1 }
 0x2a3   :  { %917 = vsyncpa [#allocation6], 1 }
 0x2a4   :  { %918 = vsyncpa [#allocation4], 1 }

</bundles_post_ra>
